<compile_context>
chip_gen: v7x
topology: tpu7x:2x2x1
jax: 0.10.0
libtpu: 0.0.40
codegen_flags: <defaults>
</compile_context>

<pallas_src>
import jax
import jax.numpy as jnp
from jax.experimental import pallas as pl
from jax.experimental.pallas import tpu as pltpu


LEAKY_SLOPE = 0.01   # F.leaky_relu default negative_slope
BN_EPS = 1e-5        # nn.BatchNorm1d default eps


def _round_up(x, m):
    return ((x + m - 1) // m) * m


def _cdiv(a, b):
    return -(-a // b)


def _leaky_relu(v):
    # single VPU max (slope < 1) instead of compare + select
    return jnp.maximum(v, LEAKY_SLOPE * v)


def base_policy_kernel(x_ref, w1_ref, b1_ref, w2_ref, b2_ref, w3_ref, b3_ref,
                       o_ref):
    """One batch tile. BN is pre-folded into (w1, b1); each fc is a bf16 MXU
    matmul with f32 accumulation followed by bias + leaky_relu."""
    h1 = _leaky_relu(
        jnp.dot(x_ref[...], w1_ref[...],
                preferred_element_type=jnp.float32) + b1_ref[...])
    h2 = _leaky_relu(
        jnp.dot(h1.astype(w2_ref.dtype), w2_ref[...],
                preferred_element_type=jnp.float32) + b2_ref[...])
    out = _leaky_relu(
        jnp.dot(h2.astype(w3_ref.dtype), w3_ref[...],
                preferred_element_type=jnp.float32) + b3_ref[...])
    o_ref[...] = out.astype(o_ref.dtype)


def _choose_batch_tiling(B, tile_b_max):
    """Balanced, sublane-aligned batch tiles; prefer >=2 tiles (v7x megacore)."""
    n_tiles = max(1, _cdiv(B, tile_b_max))
    if n_tiles < 2 and B >= 16:
        n_tiles = 2                      # keep both TensorCores busy on v7x
    tile_b = _round_up(_cdiv(B, n_tiles), 8)
    b_pad = _round_up(B, tile_b)         # waste capped at < 8 rows per tile
    return tile_b, b_pad


def base_policy_forward(x, params, *, tile_b_max=1024):
    """x: (B, input_dim). params: dict from init_params()."""
    B, D = x.shape
    assert D == params["in_dim"], "input feature dim mismatch"
    hidden = params["hidden_dim"]
    out_dim = params["out_dim"]

    # ---- BatchNorm1d(affine=False), training-mode batch statistics (two-pass
    # variance for numerical safety), folded into fc1 so the kernel never sees
    # the normalize and batch tiles stay independent.
    xf = x.astype(jnp.float32)
    mean = jnp.mean(xf, axis=0, keepdims=True)                    # (1, D)
    var = jnp.mean(jnp.square(xf - mean), axis=0, keepdims=True)  # two-pass
    rstd = jax.lax.rsqrt(var + BN_EPS)                            # (1, D)

    w1 = params["w1t"]                                  # f32 (D, hidden)
    w1f = (w1 * rstd.T).astype(params["w2t"].dtype)     # fold scale, bf16 MXU
    b1f = params["b1"] - (mean * rstd) @ w1             # fold shift, f32

    # x streamed in bf16 (halves the dominant HBM read inside the kernel).
    x_bf = x.astype(jnp.bfloat16)

    tile_b, b_pad = _choose_batch_tiling(B, tile_b_max)
    if b_pad != B:
        x_in = jnp.zeros((b_pad, D), jnp.bfloat16).at[:B].set(x_bf)
    else:
        x_in = x_bf                                     # no extra HBM pass

    grid = (b_pad // tile_b,)
    const = lambda i: (0, 0)   # weights / biases stay VMEM-resident

    # Explicit VMEM budget: double-buffered x + out tiles, double-buffered
    # (tiny) weights, plus slack for f32 intermediates / regalloc.
    weight_args = (w1f, b1f, params["w2t"], params["b2"],
                   params["w3t"], params["b3"])
    step_bytes = (2 * tile_b * D * 2                       # x tiles (bf16)
                  + 2 * tile_b * out_dim * 4               # out tiles (f32)
                  + 2 * sum(int(a.size) * a.dtype.itemsize for a in weight_args)
                  + 6 * tile_b * max(hidden, out_dim, 128) * 4)
    vmem_limit = int(min(96 * 2**20, max(32 * 2**20, 2 * step_bytes)))

    out_p = pl.pallas_call(
        base_policy_kernel,
        out_shape=jax.ShapeDtypeStruct((b_pad, out_dim), jnp.float32),
        grid=grid,
        in_specs=[
            pl.BlockSpec((tile_b, D), lambda i: (i, 0)),   # x batch tile
            pl.BlockSpec((D, hidden), const),              # w1 (BN folded)
            pl.BlockSpec((1, hidden), const),              # b1 (BN folded)
            pl.BlockSpec((hidden, hidden), const),          # w2
            pl.BlockSpec((1, hidden), const),               # b2
            pl.BlockSpec((hidden, out_dim), const),         # w3
            pl.BlockSpec((1, out_dim), const),              # b3
        ],
        out_specs=pl.BlockSpec((tile_b, out_dim), lambda i: (i, 0)),
        compiler_params=pltpu.CompilerParams(
            dimension_semantics=("parallel",),   # batch tiles -> both TCs
            vmem_limit_bytes=vmem_limit),
    )(x_in, w1f, b1f, params["w2t"], params["b2"], params["w3t"], params["b3"])

    return out_p if b_pad == B else out_p[:B]


def init_params(key, input_dim, out_dim, hidden_dim=64,
                weight_dtype=jnp.bfloat16):
    """PyTorch-Linear-style init U(-1/sqrt(fan_in), 1/sqrt(fan_in)).
    kernel_params: w1 kept f32 (BN gets folded in per call, then cast),
                   w2/w3 stored in `weight_dtype`, biases f32, no HBM padding.
    ref_params:    f32 copies (w2/w3 round-tripped through weight_dtype so the
                   reference uses the same stored numerics)."""
    ks = jax.random.split(key, 6)

    def linear(kw, kb, fan_in, fan_out):
        bound = 1.0 / (float(fan_in) ** 0.5)
        w = jax.random.uniform(kw, (fan_in, fan_out), jnp.float32, -bound, bound)
        b = jax.random.uniform(kb, (1, fan_out), jnp.float32, -bound, bound)
        return w, b

    w1, b1 = linear(ks[0], ks[1], input_dim, hidden_dim)
    w2, b2 = linear(ks[2], ks[3], hidden_dim, hidden_dim)
    w3, b3 = linear(ks[4], ks[5], hidden_dim, out_dim)

    kernel_params = dict(
        w1t=w1, b1=b1,
        w2t=w2.astype(weight_dtype), b2=b2,
        w3t=w3.astype(weight_dtype), b3=b3,
        in_dim=input_dim, hidden_dim=hidden_dim, out_dim=out_dim,
    )
    ref_params = dict(
        w1t=w1, b1=b1,
        w2t=w2.astype(weight_dtype).astype(jnp.float32), b2=b2,
        w3t=w3.astype(weight_dtype).astype(jnp.float32), b3=b3,
    )
    return kernel_params, ref_params


def reference_forward(x, ref_params):
    """Plain-JAX f32 reference (PyTorch semantics: training-mode batch stats)."""
    xf = x.astype(jnp.float32)
    mean = jnp.mean(xf, axis=0, keepdims=True)
    var = jnp.mean((xf - mean) ** 2, axis=0, keepdims=True)
    xn = (xf - mean) / jnp.sqrt(var + BN_EPS)
    h1 = _leaky_relu(xn @ ref_params["w1t"] + ref_params["b1"])
    h2 = _leaky_relu(h1 @ ref_params["w2t"] + ref_params["b2"])
    return _leaky_relu(h2 @ ref_params["w3t"] + ref_params["b3"])


if __name__ == "__main__":
    key = jax.random.PRNGKey(0)
    k_x, k_p, k_x2 = jax.random.split(key, 3)

    B, INPUT_DIM, HIDDEN_DIM, OUT_DIM = 8, 32, 64, 16
    x = jax.random.normal(k_x, (B, INPUT_DIM), jnp.float32)
    params, ref_params = init_params(k_p, INPUT_DIM, OUT_DIM, HIDDEN_DIM)

    out = jax.block_until_ready(base_policy_forward(x, params))
    ref = reference_forward(x, ref_params)
    assert out.shape == (B, OUT_DIM)
    # tolerance covers bf16 x / bf16-folded-weight MXU operands (f32 accumulation)
    assert jnp.allclose(out, ref, atol=3e-2, rtol=3e-2), "kernel mismatch vs reference"

    # Also exercise the batch-padded, multi-tile (megacore) path.
    B2 = 20
    x2 = jax.random.normal(k_x2, (B2, INPUT_DIM), jnp.float32)
    out2 = jax.block_until_ready(base_policy_forward(x2, params))
    ref2 = reference_forward(x2, ref_params)
    assert out2.shape == (B2, OUT_DIM)
    assert jnp.allclose(out2, ref2, atol=3e-2, rtol=3e-2), "padded-path mismatch"

    print("KERNEL_OK")
</pallas_src>

<mosaic_0001>
module attributes {stable_mosaic.version = 11 : i64} {
  func.func @base_policy_kernel(%arg0: i32, %arg1: memref<8x32xbf16, #tpu.memory_space<vmem>>, %arg2: memref<32x64xbf16, #tpu.memory_space<vmem>>, %arg3: memref<1x64xf32, #tpu.memory_space<vmem>>, %arg4: memref<64x64xbf16, #tpu.memory_space<vmem>>, %arg5: memref<1x64xf32, #tpu.memory_space<vmem>>, %arg6: memref<64x16xbf16, #tpu.memory_space<vmem>>, %arg7: memref<1x16xf32, #tpu.memory_space<vmem>>, %arg8: memref<8x16xf32, #tpu.memory_space<vmem>>) attributes {dimension_semantics = [#tpu.dimension_semantics<parallel>], iteration_bounds = array<i64: 1>, scalar_prefetch = 0 : i64, scratch_operands = 0 : i64, tpu.core_type = #tpu.core_type<tc>, window_params = [{transform_indices = @transform_0, window_bounds = array<i64: 8, 32>}, {pipeline_mode = #tpu.pipeline_mode<synchronous>, transform_indices = @transform_1, window_bounds = array<i64: 32, 64>}, {pipeline_mode = #tpu.pipeline_mode<synchronous>, transform_indices = @transform_2, window_bounds = array<i64: 1, 64>}, {pipeline_mode = #tpu.pipeline_mode<synchronous>, transform_indices = @transform_3, window_bounds = array<i64: 64, 64>}, {pipeline_mode = #tpu.pipeline_mode<synchronous>, transform_indices = @transform_4, window_bounds = array<i64: 1, 64>}, {pipeline_mode = #tpu.pipeline_mode<synchronous>, transform_indices = @transform_5, window_bounds = array<i64: 64, 16>}, {pipeline_mode = #tpu.pipeline_mode<synchronous>, transform_indices = @transform_6, window_bounds = array<i64: 1, 16>}, {transform_indices = @transform_7, window_bounds = array<i64: 8, 16>}]} {
    %c0 = arith.constant 0 : index
    %c0_0 = arith.constant 0 : index
    %0 = vector.load %arg1[%c0, %c0_0] : memref<8x32xbf16, #tpu.memory_space<vmem>>, vector<8x32xbf16>
    %c0_1 = arith.constant 0 : index
    %c0_2 = arith.constant 0 : index
    %1 = vector.load %arg2[%c0_1, %c0_2] : memref<32x64xbf16, #tpu.memory_space<vmem>>, vector<32x64xbf16>
    %cst = arith.constant dense<0.000000e+00> : vector<8x64xf32>
    %2 = tpu.matmul %0, %1, %cst {dimension_numbers = #tpu.dot_dimension_numbers<[1], [0], [0], [1], [0, 0, 1, 1], [], []>} : vector<8x32xbf16>, vector<32x64xbf16>, vector<8x64xf32> -> vector<8x64xf32>
    %c0_3 = arith.constant 0 : index
    %c0_4 = arith.constant 0 : index
    %3 = vector.load %arg3[%c0_3, %c0_4] : memref<1x64xf32, #tpu.memory_space<vmem>>, vector<1x64xf32>
    %4 = vector.broadcast %3 : vector<1x64xf32> to vector<8x64xf32>
    %5 = arith.addf %2, %4 : vector<8x64xf32>
    %cst_5 = arith.constant 0.00999999977 : f32
    %6 = vector.broadcast %cst_5 : f32 to vector<8x64xf32>
    %7 = arith.mulf %6, %5 : vector<8x64xf32>
    %8 = arith.maximumf %5, %7 : vector<8x64xf32>
    %9 = arith.truncf %8 : vector<8x64xf32> to vector<8x64xbf16>
    %c0_6 = arith.constant 0 : index
    %c0_7 = arith.constant 0 : index
    %10 = vector.load %arg4[%c0_6, %c0_7] : memref<64x64xbf16, #tpu.memory_space<vmem>>, vector<64x64xbf16>
    %cst_8 = arith.constant dense<0.000000e+00> : vector<8x64xf32>
    %11 = tpu.matmul %9, %10, %cst_8 {dimension_numbers = #tpu.dot_dimension_numbers<[1], [0], [0], [1], [0, 0, 1, 1], [], []>} : vector<8x64xbf16>, vector<64x64xbf16>, vector<8x64xf32> -> vector<8x64xf32>
    %c0_9 = arith.constant 0 : index
    %c0_10 = arith.constant 0 : index
    %12 = vector.load %arg5[%c0_9, %c0_10] : memref<1x64xf32, #tpu.memory_space<vmem>>, vector<1x64xf32>
    %13 = vector.broadcast %12 : vector<1x64xf32> to vector<8x64xf32>
    %14 = arith.addf %11, %13 : vector<8x64xf32>
    %cst_11 = arith.constant 0.00999999977 : f32
    %15 = vector.broadcast %cst_11 : f32 to vector<8x64xf32>
    %16 = arith.mulf %15, %14 : vector<8x64xf32>
    %17 = arith.maximumf %14, %16 : vector<8x64xf32>
    %18 = arith.truncf %17 : vector<8x64xf32> to vector<8x64xbf16>
    %c0_12 = arith.constant 0 : index
    %c0_13 = arith.constant 0 : index
    %19 = vector.load %arg6[%c0_12, %c0_13] : memref<64x16xbf16, #tpu.memory_space<vmem>>, vector<64x16xbf16>
    %cst_14 = arith.constant dense<0.000000e+00> : vector<8x16xf32>
    %20 = tpu.matmul %18, %19, %cst_14 {dimension_numbers = #tpu.dot_dimension_numbers<[1], [0], [0], [1], [0, 0, 1, 1], [], []>} : vector<8x64xbf16>, vector<64x16xbf16>, vector<8x16xf32> -> vector<8x16xf32>
    %c0_15 = arith.constant 0 : index
    %c0_16 = arith.constant 0 : index
    %21 = vector.load %arg7[%c0_15, %c0_16] : memref<1x16xf32, #tpu.memory_space<vmem>>, vector<1x16xf32>
    %22 = vector.broadcast %21 : vector<1x16xf32> to vector<8x16xf32>
    %23 = arith.addf %20, %22 : vector<8x16xf32>
    %cst_17 = arith.constant 0.00999999977 : f32
    %24 = vector.broadcast %cst_17 : f32 to vector<8x16xf32>
    %25 = arith.mulf %24, %23 : vector<8x16xf32>
    %26 = arith.maximumf %23, %25 : vector<8x16xf32>
    %c0_18 = arith.constant 0 : index
    %c0_19 = arith.constant 0 : index
    %27 = vector.load %arg8[%c0_18, %c0_19] : memref<8x16xf32, #tpu.memory_space<vmem>>, vector<8x16xf32>
    tpu.vector_store %arg8[%c0_18, %c0_19], %26 {strides = array<i32>} : memref<8x16xf32, #tpu.memory_space<vmem>>, vector<8x16xf32>,
    return
  }
  func.func @transform_0(%arg0: i32) -> (i32, i32) {
    %c0_i32 = arith.constant 0 : i32
    %c0_i32_0 = arith.constant 0 : i32
    return %arg0, %c0_i32 : i32, i32
  }
  func.func @transform_1(%arg0: i32) -> (i32, i32) {
    %c0_i32 = arith.constant 0 : i32
    %c0_i32_0 = arith.constant 0 : i32
    %c0_i32_1 = arith.constant 0 : i32
    return %c0_i32, %c0_i32_0 : i32, i32
  }
  func.func @transform_2(%arg0: i32) -> (i32, i32) {
    %c0_i32 = arith.constant 0 : i32
    %c0_i32_0 = arith.constant 0 : i32
    %c0_i32_1 = arith.constant 0 : i32
    return %c0_i32, %c0_i32_0 : i32, i32
  }
  func.func @transform_3(%arg0: i32) -> (i32, i32) {
    %c0_i32 = arith.constant 0 : i32
    %c0_i32_0 = arith.constant 0 : i32
    %c0_i32_1 = arith.constant 0 : i32
    return %c0_i32, %c0_i32_0 : i32, i32
  }
  func.func @transform_4(%arg0: i32) -> (i32, i32) {
    %c0_i32 = arith.constant 0 : i32
    %c0_i32_0 = arith.constant 0 : i32
    %c0_i32_1 = arith.constant 0 : i32
    return %c0_i32, %c0_i32_0 : i32, i32
  }
  func.func @transform_5(%arg0: i32) -> (i32, i32) {
    %c0_i32 = arith.constant 0 : i32
    %c0_i32_0 = arith.constant 0 : i32
    %c0_i32_1 = arith.constant 0 : i32
    return %c0_i32, %c0_i32_0 : i32, i32
  }
  func.func @transform_6(%arg0: i32) -> (i32, i32) {
    %c0_i32 = arith.constant 0 : i32
    %c0_i32_0 = arith.constant 0 : i32
    %c0_i32_1 = arith.constant 0 : i32
    return %c0_i32, %c0_i32_0 : i32, i32
  }
  func.func @transform_7(%arg0: i32) -> (i32, i32) {
    %c0_i32 = arith.constant 0 : i32
    %c0_i32_0 = arith.constant 0 : i32
    return %arg0, %c0_i32 : i32, i32
  }
}

</mosaic_0001>

<bundles_post_ra>
// kernel: tpu_custom_call.1
= control target key start
LH: loop header
LB: loop body
LE: loop exit
PB: predicated region body
PF: predicated region fallthrough
CT: control target
= control target key end

     0   :  { %12 = vsyncpa [#allocation3], 0  ;;  %s533_s0 = inlined_call_operand.hbm [shape: bf16[8,32], index: 0, kind: input, shape index: {}]   ;;  %s534_s1 = inlined_call_operand.vmem [shape: bf16[32,64], index: 1, kind: input, shape index: {}]   ;;  %s535_s2 = inlined_call_operand.vmem [shape: f32[1,64], index: 2, kind: input, shape index: {}]   ;;  %s536_s3 = inlined_call_operand.vmem [shape: bf16[64,64], index: 3, kind: input, shape index: {}]   ;;  %s537_s4 = inlined_call_operand.vmem [shape: f32[1,64], index: 4, kind: input, shape index: {}]   ;;  %s538_s5 = inlined_call_operand.vmem [shape: bf16[64,16], index: 5, kind: input, shape index: {}]   ;;  %s539_s6 = inlined_call_operand.vmem [shape: f32[1,16], index: 6, kind: input, shape index: {}]   ;;  %s540_s7 = inlined_call_operand.hbm [shape: f32[8,16], index: 7, kind: output, shape index: {}]  }
   0x1   :  { %13 = vsyncpa [#allocation4], 0  ;;  %s421_s24 = smov [#allocation2]   ;;  %s373_s28 = scalar_lea.hbm %s533_s0, 64 }
   0x2   :  { %s20_s25 = sshll.u32 %s421_s24, 4  ;;  %p374_p0 = scmp.ne.s32.totalorder %s533_s0, %s373_s28  ;;  %s21_s25 = int_to_ptr.vmem [resolvable:$true] %s20_s25 }
   0x3   :  { %p377_p1 = scmp.lt.u32.totalorder %s373_s28, %s533_s0 }
   0x5   :  { %p379_p2 = pnand %p377_p1, %p374_p0 }
   0x7   :  { %382 = shalt.err (!%p379_p2)
}
   0x8   :  { %s383_s10 = scalar_lea.vmem %s21_s25, 64  ;;  %p388_p4 = scmp.lt.s32.totalorder %s21_s25, %s21_s25 }
   0x9   :  { %p384_p3 = scmp.ne.s32.totalorder %s21_s25, %s383_s10  ;;  %p389_p5 = scmp.lt.s32.totalorder %s383_s10, %s383_s10 }
   0xb   :  { %p390_p6 = por %p389_p5, %p388_p4 }
   0xd   :  { %p391_p7 = pnand %p390_p6, %p384_p3 }
   0xf   :  { %394 = shalt.err (!%p391_p7)
}
  0x10   :  { %23 = dma.hbm_to_vmem [thread:$0]  %s533_s0, 64, %s21_s25, [#allocation3]  }
  0x11   :  { %417 = dma.done.wait [#allocation3], 64  }
  0x12   :  { %418 = vsyncadd [#allocation3], 4294967232  ;;  %v422_v0 = vmov 0.0   ;;  %vm423_vm0 = vmmov 0   ;;  %v363_v1 = vld [vmem:[%s534_s1] sm:$0xff]   ;;  %v364_v2 = vld [vmem:[%s534_s1 + $0x8] sm:$0xff]  }
  0x13   :  { %327 = vmatprep.subr.bf16.mxu0 %v422_v0  ;;  %331 = vmatprep.mubr.msk.bf16.mxu0 %vm423_vm0, %v422_v0  ;;  %v365_v3 = vld [vmem:[%s536_s3] sm:$0xff]   ;;  %vm64_vm1 = vcmask 261120   ;;  %v366_v5 = vld [vmem:[%s536_s3 + $0x8] sm:$0xff]   ;;  %v367_v6 = vld [vmem:[%s536_s3 + $0x10] sm:$0xff]   ;;  %vm150_vm2 = vcmask 523264   ;;  %vm281_vm3 = vcmask 130048  }
  0x14   :  { %335 = vmatprep.subr.bf16.mxu1 %v422_v0  ;;  %343 = vmatprep.mubr.msk.bf16.mxu1 %vm423_vm0, %v422_v0  ;;  %v40_v4 = vld [vmem:[#allocation2] sm:$0xf]  ;;  %v368_v7 = vld [vmem:[%s536_s3 + $0x18] sm:$0xff]   ;;  %v370_v9 = vld [vmem:[%s538_s5 + $0x8] sm:$0xff]  }
  0x15   :  { %328 = vmatpush3.bf16.msra.mxu0 %v363_v1  ;;  %336 = vmatpush3.bf16.msra.mxu1 %v365_v3  ;;  %v369_v8 = vld [vmem:[%s538_s5] sm:$0xff]   ;;  %v371_v19 = vld [vmem:[%s538_s5 + $0x10] sm:$0xff]   ;;  %v372_v20 = vld [vmem:[%s538_s5 + $0x18] sm:$0xff]   ;;  %s424_s5 = smov [#allocation5]  }
  0x16   :  { %329 = vmatprep.subr.bf16.mxu0 %v422_v0  ;;  %337 = vmatprep.subr.bf16.mxu1 %v422_v0  ;;  %v298_v10 = vld [vmem:[%s535_s2] ss:$0 sm:$0xff] }
  0x17   :  { %v302_v21 = vld [vmem:[%s537_s4] ss:$0 sm:$0xff]  ;;  %s289_s4 = sshll.u32 %s424_s5, 4  ;;  %s290_s4 = int_to_ptr.vmem [resolvable:$true] %s289_s4 }
  0x18   :  { %v308_v30 = vld [vmem:[%s539_s6] ss:$0 sm:$0xff]  ;;  %s395_s12 = scalar_lea.vmem %s290_s4, 128  ;;  %p400_p9 = scmp.lt.s32.totalorder %s290_s4, %s290_s4 }
  0x19   :  { %330 = vmatpush3.bf16.msra.mxu0 %v364_v2  ;;  %338 = vmatpush3.bf16.msra.mxu1 %v366_v5  ;;  %p396_p8 = scmp.ne.s32.totalorder %s290_s4, %s395_s12  ;;  %p401_p10 = scmp.lt.s32.totalorder %s395_s12, %s395_s12 }
  0x1a   :  { %347 = vmatprep.subr.bf16.mxu0 %v422_v0  ;;  %339 = vmatprep.subr.bf16.mxu1 %v422_v0 }
  0x1b   :  { %p402_p11 = por %p401_p10, %p400_p9 }
  0x1c   :  { %332 = vmatmul.mubr.msk.bf16.vlgmr.msra.gmra.mrb[0].mxu0 %vm64_vm1, %v40_v4 }
  0x1d   :  { %355 = vmatprep.mubr.msk.bf16.mxu0 %vm423_vm0, %v422_v0  ;;  %340 = vmatpush3.bf16.msra.mxu1 %v367_v6  ;;  %p403_p12 = pnand %p402_p11, %p396_p8 }
  0x1e   :  { %341 = vmatprep.subr.bf16.mxu1 %v422_v0  ;;  %348 = vmatpush3.bf16.msra.mxu0 %v369_v8 }
  0x1f   :  { %349 = vmatprep.subr.bf16.mxu0 %v422_v0 }
  0x21   :  { %342 = vmatpush3.bf16.msra.mxu1 %v368_v7 }
  0x22   :  { %350 = vmatpush3.bf16.msra.mxu0 %v370_v9 }
  0x23   :  { %351 = vmatprep.subr.bf16.mxu0 %v422_v0 }
  0x26   :  { %352 = vmatpush3.bf16.msra.mxu0 %v371_v19 }
  0x27   :  { %353 = vmatprep.subr.bf16.mxu0 %v422_v0 }
  0x2a   :  { %354 = vmatpush3.bf16.msra.mxu0 %v372_v20 }
  0xef   :  { %v102_v11 = vpop.f32.mrb[0].mxu0 }
  0xf0   :  { %v103_v12 = vadd.f32 %v298_v10, %v102_v11  ;;  %v333_v13 = vpop.f32.mrb[1].mxu0 }
  0xf1   :  { %v105_v14 = vpop.f32.mrb[2].mxu0 }
  0xf2   :  { %v108_v15 = vmul.f32 0.01, %v103_v12  ;;  %v334_v16 = vpop.f32.mrb[3].mxu0 }
  0xf4   :  { %v109_v17 = vmax.f32 %v103_v12, %v108_v15 }
  0xf6   :  { %v110_v18 = vpack.c.bf16 %v109_v17, %v109_v17 }
  0xf8   :  { %344 = vmatmul.mubr.msk.bf16.vlgmr.msra.gmra.mrb[0].mxu1 %vm150_vm2, %v110_v18 }
 0x1cb   :  { %v188_v22 = vpop.f32.mrb[0].mxu1 }
 0x1cc   :  { %v189_v23 = vadd.f32 %v302_v21, %v188_v22  ;;  %v345_v24 = vpop.f32.mrb[1].mxu1 }
 0x1cd   :  { %v191_v25 = vpop.f32.mrb[2].mxu1 }
 0x1ce   :  { %v194_v26 = vmul.f32 0.01, %v189_v23  ;;  %v346_v27 = vpop.f32.mrb[3].mxu1 }
 0x1d0   :  { %v195_v28 = vmax.f32 %v189_v23, %v194_v26 }
 0x1d2   :  { %v196_v29 = vpack.c.bf16 %v195_v28, %v195_v28 }
 0x1d4   :  { %356 = vmatmul.mubr.msk.bf16.vlgmr.msra.gmra.mrb[4].mxu0 %vm150_vm2, %v196_v29 }
 0x2a7   :  { %v273_v31 = vpop.f32.mrb[4].mxu0 }
 0x2a8   :  { %v274_v32 = vadd.f32 %v308_v30, %v273_v31  ;;  %v357_v33 = vpop.f32.mrb[5].mxu0 }
 0x2a9   :  { %v276_v34 = vpop.f32.mrb[6].mxu0 }
 0x2aa   :  { %v279_v35 = vmul.f32 0.01, %v274_v32  ;;  %v358_v36 = vpop.f32.mrb[7].mxu0 }
 0x2ac   :  { %v280_v37 = vmax.f32 %v274_v32, %v279_v35 }
 0x2ae   :  { %282 = vst.msk [vmem:[#allocation5] sm:$0xff] %vm281_vm3, %v280_v37 }
 0x2af   :  { %406 = shalt.err (!%p403_p12)
}
 0x2b0   :  { %s407_s14 = scalar_lea.hbm %s540_s7, 128 }
 0x2b1   :  { %p408_p13 = scmp.ne.s32.totalorder %s540_s7, %s407_s14  ;;  %p411_p0 = scmp.lt.u32.totalorder %s407_s14, %s540_s7 }
 0x2b3   :  { %p413_p1 = pnand %p411_p0, %p408_p13 }
 0x2b5   :  { %416 = shalt.err (!%p413_p1)
}
 0x2b6   :  { %292 = dma.vmem_to_hbm [thread:$0]  %s290_s4, 128, %s540_s7, [#allocation4]  }
 0x2b7   :  { %419 = dma.done.wait [#allocation4], 128  }
 0x2b8   :  { %420 = vsyncadd [#allocation4], 4294967168 }
 0x2b9   :  { %296 = vsyncpa [#allocation3], 1 }
 0x2ba   :  { %297 = vsyncpa [#allocation4], 1 }

</bundles_post_ra>
